<compile_context>
chip_gen: v7x
topology: tpu7x:2x2x1
jax: 0.10.0
libtpu: 0.0.40
codegen_flags: <defaults>
</compile_context>

<pallas_src>
import functools

import jax
import jax.numpy as jnp
from jax import lax
from jax.experimental import pallas as pl
from jax.experimental.pallas import tpu as pltpu

_LANE = 128
_BLOCK_BUDGET_DEFAULT = 8 * 1024 * 1024   # bytes per input block (2x double-buffer << 64 MiB)
_VMEM_LIMIT_BYTES = 40 * 1024 * 1024      # safe on v5e/v6e (128 MiB) and v7x (64 MiB)


def _round_up(v, m):
    return ((v + m - 1) // m) * m


def _mean_rows_full_kernel(x_ref, o_ref, *, inv_c, n_full, rem):
    """Whole reduction row present in the block; 1-D grid over row tiles."""
    total = None
    if n_full > 0:
        # Chunked VPU accumulation over 128-lane slabs; promote to f32 only at the add.
        # TR <= 128 keeps the carried [TR, 128] f32 accumulator at <= 16 vregs.
        acc = x_ref[:, 0:_LANE].astype(jnp.float32)
        for c in range(1, n_full):
            acc = acc + x_ref[:, c * _LANE:(c + 1) * _LANE].astype(jnp.float32)
        total = jnp.sum(acc, axis=1, keepdims=True)        # single XLU cross-lane reduce
    if rem > 0:
        tail = jnp.sum(x_ref[:, n_full * _LANE:].astype(jnp.float32),
                       axis=1, keepdims=True)
        total = tail if total is None else total + tail
    o_ref[...] = (total * inv_c).astype(o_ref.dtype)


def _mean_rows_tiled_kernel(x_ref, o_ref, acc_ref, *, inv_c, n_chunks, tc, cols, mask_cols):
    """Very wide rows: reduction tiled along grid axis 1, resident f32 accumulator."""
    j = pl.program_id(1)

    @pl.when(j == 0)
    def _init():
        acc_ref[...] = jnp.zeros_like(acc_ref)

    acc = acc_ref[...]
    if mask_cols:
        lane_ids = lax.broadcasted_iota(jnp.int32, acc.shape, 1)
        col_base = j * tc
    for c in range(n_chunks):
        chunk = x_ref[:, c * _LANE:(c + 1) * _LANE].astype(jnp.float32)
        if mask_cols:
            chunk = jnp.where(lane_ids + (col_base + c * _LANE) < cols, chunk, 0.0)
        acc = acc + chunk
    acc_ref[...] = acc

    @pl.when(j == pl.num_programs(1) - 1)
    def _finalize():
        s = jnp.sum(acc_ref[...], axis=1, keepdims=True)
        o_ref[...] = (s * inv_c).astype(o_ref.dtype)


def mean_with_redundant_view(x: jax.Array, *,
                             block_budget_bytes: int = _BLOCK_BUDGET_DEFAULT) -> jax.Array:
    """Equivalent to torch.mean(x, dim=1, keepdim=True) followed by a no-op view."""
    R, C = x.shape
    itemsize = jnp.dtype(x.dtype).itemsize
    sub = {4: 8, 2: 16, 1: 32}.get(itemsize, 8)   # sublane packing multiple per dtype

    # Row tile: multiple of `sub`, capped at 128 (bounded vreg pressure), and giving
    # >= 2 row tiles whenever R allows it so v7x's two TensorCores both get work.
    if R <= sub:
        TR = R                                    # full extent: always a legal block dim
    else:
        TR = min(128, _round_up(pl.cdiv(R, 2), sub))
    grid_rows = pl.cdiv(R, TR)

    inv_c = 1.0 / C
    cost = pl.CostEstimate(flops=R * C, transcendentals=0,
                           bytes_accessed=R * C * itemsize + R * itemsize)

    if TR * C * itemsize <= block_budget_bytes:
        # Fast path: TC = C, 1-D grid, contiguous row DMAs, single reduction step.
        kernel = functools.partial(_mean_rows_full_kernel, inv_c=inv_c,
                                   n_full=C // _LANE, rem=C % _LANE)
        out = pl.pallas_call(
            kernel,
            out_shape=jax.ShapeDtypeStruct((R, 1), x.dtype),
            grid_spec=pltpu.PrefetchScalarGridSpec(
                num_scalar_prefetch=0,
                grid=(grid_rows,),
                in_specs=[pl.BlockSpec((TR, C), lambda i: (i, 0))],
                out_specs=pl.BlockSpec((TR, 1), lambda i: (i, 0)),
            ),
            compiler_params=pltpu.CompilerParams(
                dimension_semantics=("parallel",),
                vmem_limit_bytes=_VMEM_LIMIT_BYTES,
            ),
            cost_estimate=cost,
        )(x)
    else:
        # Wide-row path: 2-D grid, reduction axis last, cdiv grid + lane masking.
        TC = max(_LANE, (block_budget_bytes // (TR * itemsize)) // _LANE * _LANE)
        TC = min(TC, _round_up(C, _LANE))
        grid_cols = pl.cdiv(C, TC)
        kernel = functools.partial(_mean_rows_tiled_kernel, inv_c=inv_c,
                                   n_chunks=TC // _LANE, tc=TC, cols=C,
                                   mask_cols=(C % TC != 0))
        out = pl.pallas_call(
            kernel,
            out_shape=jax.ShapeDtypeStruct((R, 1), x.dtype),
            grid_spec=pltpu.PrefetchScalarGridSpec(
                num_scalar_prefetch=0,
                grid=(grid_rows, grid_cols),
                in_specs=[pl.BlockSpec((TR, TC), lambda i, j: (i, j))],
                # Output block is per row tile (constant across the reduction axis) and
                # is written exactly once, at the last column step.
                out_specs=pl.BlockSpec((TR, 1), lambda i, j: (i, 0)),
                scratch_shapes=[pltpu.VMEM((TR, _LANE), jnp.float32)],
            ),
            compiler_params=pltpu.CompilerParams(
                dimension_semantics=("parallel", "arbitrary"),
                vmem_limit_bytes=_VMEM_LIMIT_BYTES,
            ),
            cost_estimate=cost,
        )(x)

    # The redundant aten.view(z, z.shape) is an identity reshape.
    return out.reshape(out.shape)


if __name__ == "__main__":
    key = jax.random.PRNGKey(0)
    k0, k1, k2, k3, k4 = jax.random.split(key, 5)

    # 1) Small case matching the PyTorch example input shape (5, 5).
    x_small = jax.random.normal(k0, (5, 5), dtype=jnp.float32)
    z_small = mean_with_redundant_view(x_small)
    jax.block_until_ready(z_small)
    assert z_small.shape == (5, 1), z_small.shape
    assert jnp.allclose(z_small, jnp.mean(x_small, axis=1, keepdims=True),
                        atol=1e-6, rtol=1e-6)

    # 2) Aligned f32: fast path, 2 row tiles, chunked f32 accumulation, no tail.
    x_big = jax.random.normal(k1, (256, 512), dtype=jnp.float32)
    z_big = mean_with_redundant_view(x_big)
    jax.block_until_ready(z_big)
    assert z_big.shape == (256, 1)
    assert jnp.allclose(z_big, jnp.mean(x_big, axis=1, keepdims=True),
                        atol=1e-5, rtol=1e-5)

    # 3) bf16 input: fast path with f32 chunk accumulation and 2 row tiles.
    x_bf16 = jax.random.normal(k2, (64, 384), dtype=jnp.float32).astype(jnp.bfloat16)
    z_bf16 = mean_with_redundant_view(x_bf16)
    jax.block_until_ready(z_bf16)
    ref_bf16 = jnp.mean(x_bf16.astype(jnp.float32), axis=1, keepdims=True)
    assert z_bf16.dtype == jnp.bfloat16 and z_bf16.shape == (64, 1)
    assert jnp.allclose(z_bf16.astype(jnp.float32), ref_bf16, atol=1e-2, rtol=1e-2)

    # 4) Ragged dims (C not a multiple of 128, R not a multiple of the row tile):
    #    exercises the lane-tail reduce and discarded padded output rows.
    x_rag = jax.random.normal(k3, (40, 200), dtype=jnp.float32)
    z_rag = mean_with_redundant_view(x_rag)
    jax.block_until_ready(z_rag)
    assert z_rag.shape == (40, 1)
    assert jnp.allclose(z_rag, jnp.mean(x_rag, axis=1, keepdims=True),
                        atol=1e-5, rtol=1e-5)

    # 5) Force the wide-row 2-D path (cdiv grid + column masking) with a tiny budget.
    x_wide = jax.random.normal(k4, (48, 1000), dtype=jnp.float32)
    z_wide = mean_with_redundant_view(x_wide, block_budget_bytes=64 * 1024)
    jax.block_until_ready(z_wide)
    assert z_wide.shape == (48, 1)
    assert jnp.allclose(z_wide, jnp.mean(x_wide, axis=1, keepdims=True),
                        atol=1e-5, rtol=1e-5)

    print("KERNEL_OK")
</pallas_src>

<mosaic_0001>
module attributes {stable_mosaic.version = 11 : i64} {
  func.func @_mean_rows_full_kernel(%arg0: i32, %arg1: memref<5x5xf32, #tpu.memory_space<vmem>>, %arg2: memref<5x1xf32, #tpu.memory_space<vmem>>) attributes {dimension_semantics = [#tpu.dimension_semantics<parallel>], iteration_bounds = array<i64: 1>, scalar_prefetch = 0 : i64, scratch_operands = 0 : i64, tpu.core_type = #tpu.core_type<tc>, window_params = [{transform_indices = @transform_0, window_bounds = array<i64: 5, 5>}, {transform_indices = @transform_1, window_bounds = array<i64: 5, 1>}]} {
    %c0 = arith.constant 0 : index
    %c0_0 = arith.constant 0 : index
    %0 = vector.load %arg1[%c0, %c0_0] : memref<5x5xf32, #tpu.memory_space<vmem>>, vector<5x5xf32>
    %cst = arith.constant dense<0.000000e+00> : vector<5xf32>
    %1 = vector.multi_reduction <add>, %0, %cst [1] : vector<5x5xf32> to vector<5xf32>
    %2 = vector.shape_cast %1 : vector<5xf32> to vector<5x1xf32>
    %cst_1 = arith.constant 2.000000e-01 : f32
    %3 = vector.broadcast %cst_1 : f32 to vector<5x1xf32>
    %4 = arith.mulf %2, %3 : vector<5x1xf32>
    %c0_2 = arith.constant 0 : index
    %c0_3 = arith.constant 0 : index
    %5 = vector.load %arg2[%c0_2, %c0_3] : memref<5x1xf32, #tpu.memory_space<vmem>>, vector<5x1xf32>
    tpu.vector_store %arg2[%c0_2, %c0_3], %4 {strides = array<i32>} : memref<5x1xf32, #tpu.memory_space<vmem>>, vector<5x1xf32>,
    return
  }
  func.func @transform_0(%arg0: i32) -> (i32, i32) {
    %c0_i32 = arith.constant 0 : i32
    %c0_i32_0 = arith.constant 0 : i32
    return %arg0, %c0_i32 : i32, i32
  }
  func.func @transform_1(%arg0: i32) -> (i32, i32) {
    %c0_i32 = arith.constant 0 : i32
    %c0_i32_0 = arith.constant 0 : i32
    return %arg0, %c0_i32 : i32, i32
  }
}

</mosaic_0001>

<bundles_post_ra>
// kernel: tpu_custom_call.1
= control target key start
LH: loop header
LB: loop body
LE: loop exit
PB: predicated region body
PF: predicated region fallthrough
CT: control target
= control target key end

     0   :  { %6 = vsyncpa [#allocation3], 0  ;;  %s58_s6 = smov [#allocation2]   ;;  %s84_s0 = inlined_call_operand.hbm [shape: f32[5,5], index: 0, kind: input, shape index: {}]   ;;  %s85_s1 = inlined_call_operand.vmem [shape: f32[5,1], index: 1, kind: output, shape index: {}]  }
   0x1   :  { %s13_s7 = sshll.u32 %s58_s6, 4  ;;  %s34_s10 = scalar_lea.hbm %s84_s0, 128  ;;  %s14_s7 = int_to_ptr.vmem [resolvable:$true] %s13_s7 }
   0x2   :  { %p35_p0 = scmp.ne.s32.totalorder %s84_s0, %s34_s10  ;;  %p38_p1 = scmp.lt.u32.totalorder %s34_s10, %s84_s0 }
   0x4   :  { %p40_p2 = pnand %p38_p1, %p35_p0 }
   0x6   :  { %43 = shalt.err (!%p40_p2)
}
   0x7   :  { %s44_s15 = scalar_lea.vmem %s14_s7, 128  ;;  %p49_p4 = scmp.lt.s32.totalorder %s14_s7, %s14_s7 }
   0x8   :  { %p45_p3 = scmp.ne.s32.totalorder %s14_s7, %s44_s15  ;;  %p50_p5 = scmp.lt.s32.totalorder %s44_s15, %s44_s15 }
   0xa   :  { %p51_p6 = por %p50_p5, %p49_p4 }
   0xc   :  { %p52_p7 = pnand %p51_p6, %p45_p3 }
   0xe   :  { %55 = shalt.err (!%p52_p7)
}
   0xf   :  { %16 = dma.hbm_to_vmem [thread:$0]  %s84_s0, 128, %s14_s7, [#allocation3]  }
  0x10   :  { %56 = dma.done.wait [#allocation3], 128  }
  0x11   :  { %57 = vsyncadd [#allocation3], 4294967168  ;;  %vm21_vm0 = vcmask 36864   ;;  %v20_v0 = vld [vmem:[#allocation2] sm:$0x1f]  ;;  %vm26_vm1 = vcmask 4096  }
  0x12   :  { %v22_v1 = vsel %vm21_vm0, %v20_v0, 0.0 }
  0x13   :  { %23 = vadd.xlane.f32.xlu0 %v22_v1 }
  0xa0   :  { %v24_v2 = vpop.xlane.xlu0 %23 }
  0xa1   :  { %v25_v3 = vmul.f32 0.2, %v24_v2 }
  0xa3   :  { %27 = vst.msk [vmem:[%s85_s1] sm:$0x1f] %vm26_vm1, %v25_v3 }
  0xa4   :  { %32 = vsyncpa [#allocation3], 1 }

</bundles_post_ra>
